<compile_context>
chip_gen: v7x
topology: tpu7x:2x2x1
jax: 0.10.0
libtpu: 0.0.40
codegen_flags: <defaults>
</compile_context>

<pallas_src>
import jax
import jax.numpy as jnp
from jax.experimental import pallas as pl
from jax.experimental.pallas import tpu as pltpu


def _conv1x1_kernel(w_ref, x_ref, o_ref):
    # w_ref: [tc_out, C_in] f32, x_ref: [C_in, H*W] f32, o_ref: [tc_out, H*W] f32
    # In-kernel bf16 casts (hidden under DMA) -> single-pass bf16 MXU, f32 accumulate.
    w = w_ref[...].astype(jnp.bfloat16)
    x = x_ref[...].astype(jnp.bfloat16)
    o_ref[...] = jnp.dot(w, x, preferred_element_type=jnp.float32)


def conv2d_1x1(x, weight, *, co_tiles=None):
    """1x1 conv, stride 1, no bias.

    x:      [N, C_in, H, W]     (NCHW, matching PyTorch)
    weight: [C_out, C_in, 1, 1] (OIHW, matching PyTorch)
    returns [N, C_out, H, W]    (float32)
    """
    N, C_in, H, W = x.shape
    C_out = weight.shape[0]
    HW = H * W

    # Two output-channel tiles -> both TCs on v7x; neutral on v5e/v6e.
    if co_tiles is None:
        co_tiles = 2 if (C_out % 16 == 0) else 1
    tc = C_out // co_tiles  # multiple of 8 (or == C_out), satisfies (8,128) rule

    # Free reshapes only -- no HBM transposes, no wrapper-side dtype passes.
    x_mat = x.reshape(N, C_in, HW)        # [N, C_in, HW]  f32
    w_mat = weight.reshape(C_out, C_in)   # [C_out, C_in]  f32

    flops = 2 * N * HW * C_in * C_out
    bytes_accessed = (
        x_mat.size * x_mat.dtype.itemsize
        + w_mat.size * w_mat.dtype.itemsize
        + N * C_out * HW * 4
    )

    out = pl.pallas_call(
        _conv1x1_kernel,
        out_shape=jax.ShapeDtypeStruct((N, C_out, HW), jnp.float32),
        grid=(N, co_tiles),
        in_specs=[
            # Weight tile: one C_out slab per grid step along axis 1.
            pl.BlockSpec((tc, C_in), lambda n, j: (j, 0)),
            # Activations: same block for every C_out tile -> fetched once per image.
            pl.BlockSpec((None, C_in, HW), lambda n, j: (n, 0, 0)),
        ],
        out_specs=pl.BlockSpec((None, tc, HW), lambda n, j: (n, j, 0)),
        compiler_params=pltpu.CompilerParams(
            dimension_semantics=("parallel", "parallel"),
        ),
        cost_estimate=pl.CostEstimate(
            flops=flops, transcendentals=0, bytes_accessed=bytes_accessed
        ),
    )(w_mat, x_mat)

    # Free reshape back to NCHW.
    return out.reshape(N, C_out, H, W)


if __name__ == "__main__":
    key = jax.random.PRNGKey(0)
    kx, kw = jax.random.split(key)

    # Shapes implied by the module: Conv2d(200, 1200, kernel=1) on [1, 200, 14, 14].
    N, C_in, H, W, C_out = 1, 200, 14, 14, 1200
    x = jax.random.normal(kx, (N, C_in, H, W), dtype=jnp.float32)
    w = jax.random.normal(kw, (C_out, C_in, 1, 1), dtype=jnp.float32) * 0.02

    out = jax.block_until_ready(conv2d_1x1(x, w))
    assert out.shape == (N, C_out, H, W), out.shape
    assert out.dtype == jnp.float32

    # Exact-path reference: same bf16 input casts, f32 accumulation.
    x_bf = x.reshape(C_in, H * W).astype(jnp.bfloat16)
    w_bf = w.reshape(C_out, C_in).astype(jnp.bfloat16)
    ref_bf = jnp.dot(w_bf, x_bf, preferred_element_type=jnp.float32).reshape(
        N, C_out, H, W
    )
    assert jnp.allclose(out, ref_bf, atol=1e-3, rtol=1e-3)

    # Loose sanity check against the full-f32 XLA conv (bf16 matmul inputs).
    ref_f32 = jax.lax.conv_general_dilated(
        x, w, window_strides=(1, 1), padding="VALID",
        dimension_numbers=("NCHW", "OIHW", "NCHW"),
    )
    assert jnp.allclose(out, ref_f32, atol=2e-2, rtol=2e-2)

    print("KERNEL_OK")
</pallas_src>

<mosaic_0001>
module attributes {stable_mosaic.version = 11 : i64} {
  func.func @_conv1x1_kernel(%arg0: i32, %arg1: i32, %arg2: memref<600x200xf32, #tpu.memory_space<vmem>>, %arg3: memref<1x200x196xf32, #tpu.memory_space<vmem>>, %arg4: memref<1x600x196xf32, #tpu.memory_space<vmem>>) attributes {dimension_semantics = [#tpu.dimension_semantics<parallel>, #tpu.dimension_semantics<parallel>], iteration_bounds = array<i64: 1, 2>, scalar_prefetch = 0 : i64, scratch_operands = 0 : i64, tpu.core_type = #tpu.core_type<tc>, window_params = [{transform_indices = @transform_0, window_bounds = array<i64: 600, 200>}, {transform_indices = @transform_1, window_bounds = array<i64: 1, 200, 196>}, {transform_indices = @transform_2, window_bounds = array<i64: 1, 600, 196>}]} {
    %c0 = arith.constant 0 : index
    %c0_0 = arith.constant 0 : index
    %0 = vector.load %arg2[%c0, %c0_0] : memref<600x200xf32, #tpu.memory_space<vmem>>, vector<600x200xf32>
    %1 = arith.truncf %0 : vector<600x200xf32> to vector<600x200xbf16>
    %c0_1 = arith.constant 0 : index
    %c0_2 = arith.constant 0 : index
    %c0_3 = arith.constant 0 : index
    %2 = vector.load %arg3[%c0_1, %c0_2, %c0_3] : memref<1x200x196xf32, #tpu.memory_space<vmem>>, vector<1x200x196xf32>
    %3 = vector.shape_cast %2 : vector<1x200x196xf32> to vector<200x196xf32>
    %4 = arith.truncf %3 : vector<200x196xf32> to vector<200x196xbf16>
    %cst = arith.constant dense<0.000000e+00> : vector<600x196xf32>
    %5 = tpu.matmul %1, %4, %cst {dimension_numbers = #tpu.dot_dimension_numbers<[1], [0], [0], [1], [0, 0, 1, 1], [], []>} : vector<600x200xbf16>, vector<200x196xbf16>, vector<600x196xf32> -> vector<600x196xf32>
    %c0_4 = arith.constant 0 : index
    %c0_5 = arith.constant 0 : index
    %c0_6 = arith.constant 0 : index
    %6 = vector.load %arg4[%c0_4, %c0_5, %c0_6] : memref<1x600x196xf32, #tpu.memory_space<vmem>>, vector<1x600x196xf32>
    %7 = vector.shape_cast %6 : vector<1x600x196xf32> to vector<600x196xf32>
    %8 = vector.shape_cast %5 : vector<600x196xf32> to vector<1x600x196xf32>
    tpu.vector_store %arg4[%c0_4, %c0_5, %c0_6], %8 {strides = array<i32>} : memref<1x600x196xf32, #tpu.memory_space<vmem>>, vector<1x600x196xf32>,
    return
  }
  func.func @transform_0(%arg0: i32, %arg1: i32) -> (i32, i32) {
    %c0_i32 = arith.constant 0 : i32
    %c0_i32_0 = arith.constant 0 : i32
    return %arg1, %c0_i32 : i32, i32
  }
  func.func @transform_1(%arg0: i32, %arg1: i32) -> (i32, i32, i32) {
    %c0_i32 = arith.constant 0 : i32
    %c0_i32_0 = arith.constant 0 : i32
    %c0_i32_1 = arith.constant 0 : i32
    return %arg0, %c0_i32, %c0_i32_0 : i32, i32, i32
  }
  func.func @transform_2(%arg0: i32, %arg1: i32) -> (i32, i32, i32) {
    %c0_i32 = arith.constant 0 : i32
    %c0_i32_0 = arith.constant 0 : i32
    return %arg0, %arg1, %c0_i32 : i32, i32, i32
  }
}

</mosaic_0001>

<bundles_post_ra>
// kernel: tpu_custom_call.1
= control target key start
LH: loop header
LB: loop body
LE: loop exit
PB: predicated region body
PF: predicated region fallthrough
CT: control target
= control target key end

     0   :  { %s1425_s9 = smov 0   ;;  %s1427_s10 = smov 0   ;;  %s2041_s0 = inlined_call_operand.vmem [shape: f32[1200,200], index: 0, kind: input, shape index: {}]   ;;  %s2042_s1 = inlined_call_operand.vmem [shape: f32[1,200,196], index: 1, kind: input, shape index: {}]   ;;  %s2043_s2 = inlined_call_operand.vmem [shape: f32[1,1200,196], index: 2, kind: output, shape index: {}]  }
   0x1   :  { %s1429_s11 = smov 0  }
   0x2 LB: > { %s21_s12 = sadd.s32 1, %s1404_s10  ;;  %p1288_p0 = scmp.ge.s32.totalorder %s1408_s11, 1  ;;  %s1408_s11 = sphi %s1429_s11, %s12_s11   ;;  %s1404_s10 = sphi %s1427_s10, %s2046_s10   ;;  %s1400_s9 = sphi %s1425_s9, %s2045_s9  }
   0x3   : > { %p22_p1 = scmp.ge.s32.totalorder %s21_s12, 2  ;;  %p138_p2 = scmp.lt.s32.totalorder %s1408_s11, 3 }
   0x5   : > { %s2048_s12 = smov (%p22_p1, %s21_s12), 0  ;;  %p139_p3 = pnand %p1288_p0, %p138_p2 }
   0x6   : > { %v422_v0 = vld [vmem:[%s2042_s1 + $0x8] sm:$0xff] (!%p139_p3)  ;;  %v424_v1 = vld [vmem:[%s2042_s1 + $0x18] sm:$0xff] (!%p139_p3)  ;;  %v421_v2 = vld [vmem:[%s2042_s1] sm:$0xff] (!%p139_p3)  ;;  %s171_s19 = smul.u32 (!%p139_p3), 75, %s1400_s9  ;;  %vm497_vm0 = vcmask (!%p139_p3), 588800   ;;  %vm612_vm1 = vcmask (!%p139_p3), 1043456  }
   0x7   : > { %142 = sbr.rel (%p139_p3) target bundleno = 421 (0x1a5), region = 28  ;;  %v472_v3 = vpack.c.bf16 (!%p139_p3), %v424_v1, %v422_v0  ;;  %v423_v4 = vld [vmem:[%s2042_s1 + $0x10] sm:$0xff] (!%p139_p3)  ;;  %v426_v5 = vld [vmem:[%s2042_s1 + $0x28] sm:$0xff] (!%p139_p3)  ;;  %v428_v6 = vld [vmem:[%s2042_s1 + $0x38] sm:$0xff] (!%p139_p3)  ;;  %vm1031_vm2 = vcmask (!%p139_p3), 556032  }
   0x8   : > { %v471_v7 = vpack.c.bf16 (!%p139_p3), %v423_v4, %v421_v2  ;;  %v474_v8 = vpack.c.bf16 (!%p139_p3), %v428_v6, %v426_v5  ;;  %v425_v9 = vld [vmem:[%s2042_s1 + $0x20] sm:$0xff] (!%p139_p3)  ;;  %v427_v10 = vld [vmem:[%s2042_s1 + $0x30] sm:$0xff] (!%p139_p3)  ;;  %v430_v11 = vld [vmem:[%s2042_s1 + $0x48] sm:$0xff] (!%p139_p3)  ;;  %p1473_p4 = scmp.lt.s32.totalorder (!%p139_p3), %s171_s19, 149 }
   0x9   : > { %619 = vmatprep.subr.bf16.mxu0 (!%p139_p3), %v472_v3  ;;  %1336 = vmatprep.subr.bf16.mxu1 (!%p139_p3), %v472_v3  ;;  %v432_v12 = vld [vmem:[%s2042_s1 + $0x58] sm:$0xff] (!%p139_p3)  ;;  %v473_v13 = vpack.c.bf16 (!%p139_p3), %v427_v10, %v425_v9  ;;  %v429_v15 = vld [vmem:[%s2042_s1 + $0x40] sm:$0xff] (!%p139_p3)  ;;  %v431_v16 = vld [vmem:[%s2042_s1 + $0x50] sm:$0xff] (!%p139_p3) }
   0xa   : > { %620 = vmatpush1.bf16.msra.mxu0 (!%p139_p3), %v471_v7  ;;  %1349 = vmatpush1.bf16.msra.mxu1 (!%p139_p3), %v471_v7  ;;  %v476_v14 = vpack.c.bf16 (!%p139_p3), %v432_v12, %v430_v11  ;;  %v434_v17 = vld [vmem:[%s2042_s1 + $0x68] sm:$0xff] (!%p139_p3)  ;;  %v436_v18 = vld [vmem:[%s2042_s1 + $0x78] sm:$0xff] (!%p139_p3)  ;;  %v475_v19 = vpack.c.bf16 (!%p139_p3), %v431_v16, %v429_v15  ;;  %v433_v21 = vld [vmem:[%s2042_s1 + $0x60] sm:$0xff] (!%p139_p3) }
   0xb   : > { %621 = vmatprep.subr.bf16.mxu0 (!%p139_p3), %v474_v8  ;;  %1337 = vmatprep.subr.bf16.mxu1 (!%p139_p3), %v474_v8  ;;  %v478_v20 = vpack.c.bf16 (!%p139_p3), %v436_v18, %v434_v17  ;;  %v435_v22 = vld [vmem:[%s2042_s1 + $0x70] sm:$0xff] (!%p139_p3)  ;;  %v438_v23 = vld [vmem:[%s2042_s1 + $0x88] sm:$0xff] (!%p139_p3)  ;;  %v440_v24 = vld [vmem:[%s2042_s1 + $0x98] sm:$0xff] (!%p139_p3) }
   0xc   : > { %v477_v25 = vpack.c.bf16 (!%p139_p3), %v435_v22, %v433_v21  ;;  %v480_v26 = vpack.c.bf16 (!%p139_p3), %v440_v24, %v438_v23  ;;  %v437_v27 = vld [vmem:[%s2042_s1 + $0x80] sm:$0xff] (!%p139_p3)  ;;  %v439_v28 = vld [vmem:[%s2042_s1 + $0x90] sm:$0xff] (!%p139_p3)  ;;  %v442_v29 = vld [vmem:[%s2042_s1 + $0xa8] sm:$0xff] (!%p139_p3) }
   0xd   : > { %v444_v30 = vld [vmem:[%s2042_s1 + $0xb8] sm:$0xff] (!%p139_p3)  ;;  %v479_v31 = vpack.c.bf16 (!%p139_p3), %v439_v28, %v437_v27  ;;  %v441_v32 = vld [vmem:[%s2042_s1 + $0xa0] sm:$0xff] (!%p139_p3)  ;;  %v443_v33 = vld [vmem:[%s2042_s1 + $0xb0] sm:$0xff] (!%p139_p3) }
   0xe   : > { %s2050_s19 = smov (!%p1473_p4, %s171_s19), 149  ;;  %622 = vmatpush1.bf16.msra.mxu0 %v473_v13  ;;  %1350 = vmatpush1.bf16.msra.mxu1 %v473_v13  ;;  %v482_v35 = vpack.c.bf16 %v444_v30, %v442_v29  ;;  %v446_v39 = vld [vmem:[%s2042_s1 + $0xc8] sm:$0xff]  ;;  %v448_v40 = vld [vmem:[%s2042_s1 + $0xd8] sm:$0xff]  ;;  %v481_v43 = vpack.c.bf16 %v443_v33, %v441_v32  ;;  %v445_v45 = vld [vmem:[%s2042_s1 + $0xc0] sm:$0xff] }
   0xf   : > { %623 = vmatprep.subr.bf16.mxu0 %v476_v14  ;;  %1338 = vmatprep.subr.bf16.mxu1 %v476_v14  ;;  %s1334_s27 = sshll.u32 %s2050_s19, 4  ;;  %v484_v44 = vpack.c.bf16 %v448_v40, %v446_v39  ;;  %v447_v46 = vld [vmem:[%s2042_s1 + $0xd0] sm:$0xff]  ;;  %v450_v47 = vld [vmem:[%s2042_s1 + $0xe8] sm:$0xff]  ;;  %v452_v48 = vld [vmem:[%s2042_s1 + $0xf8] sm:$0xff] }
  0x10   : > { %s1520_s6 = scalar_lea.vmem %s2041_s0, %s1334_s27  ;;  %v483_v49 = vpack.c.bf16 %v447_v46, %v445_v45  ;;  %v486_v50 = vpack.c.bf16 %v452_v48, %v450_v47  ;;  %v449_v51 = vld [vmem:[%s2042_s1 + $0xe0] sm:$0xff]  ;;  %v451_v52 = vld [vmem:[%s2042_s1 + $0xf0] sm:$0xff]  ;;  %v454_v53 = vld [vmem:[%s2042_s1 + $0x108] sm:$0xff]  ;;  %s1805_s30 = scalar_lea.vmem %s2043_s2, %s1334_s27 }
  0x11   : > { %v196_v34 = vld [vmem:[%s1520_s6 + $0x8] sm:$0xff]  ;;  %v198_v36 = vld [vmem:[%s1520_s6 + $0x18] sm:$0xff]  ;;  %v485_v55 = vpack.c.bf16 %v451_v52, %v449_v51  ;;  %v453_v57 = vld [vmem:[%s2042_s1 + $0x100] sm:$0xff] }
  0x12   : > { %624 = vmatpush1.bf16.msra.mxu0 %v475_v19  ;;  %1351 = vmatpush1.bf16.msra.mxu1 %v475_v19  ;;  %v272_v37 = vld [vmem:[%s1520_s6 + $0x268] sm:$0xff]  ;;  %v274_v38 = vld [vmem:[%s1520_s6 + $0x278] sm:$0xff]  ;;  %v346_v41 = vpack.c.bf16 %v198_v36, %v196_v34  ;;  %v455_v58 = vld [vmem:[%s2042_s1 + $0x110] sm:$0xff] }
  0x13   : > { %625 = vmatprep.subr.bf16.mxu0 %v478_v20  ;;  %1339 = vmatprep.subr.bf16.mxu1 %v478_v20  ;;  %v384_v42 = vpack.c.bf16 %v274_v38, %v272_v37  ;;  %v456_v54 = vld [vmem:[%s2042_s1 + $0x118] sm:$0xff]  ;;  %v458_v59 = vld [vmem:[%s2042_s1 + $0x128] sm:$0xff]  ;;  %v487_v61 = vpack.c.bf16 %v455_v58, %v453_v57  ;;  %v457_v63 = vld [vmem:[%s2042_s1 + $0x120] sm:$0xff] }
  0x14   : > { %1294 = vmatprep.mubr.msk.bf16.mxu0 %vm497_vm0, %v346_v41  ;;  %v488_v56 = vpack.c.bf16 %v456_v54, %v454_v53  ;;  %v460_v60 = vld [vmem:[%s2042_s1 + $0x138] sm:$0xff]  ;;  %v459_v0 = vld [vmem:[%s2042_s1 + $0x130] sm:$0xff]  ;;  %v462_v1 = vld [vmem:[%s2042_s1 + $0x148] sm:$0xff] }
  0x15   : > { %1313 = vmatprep.mubr.msk.bf16.mxu1 %vm497_vm0, %v384_v42  ;;  %v490_v62 = vpack.c.bf16 %v460_v60, %v458_v59  ;;  %v464_v2 = vld [vmem:[%s2042_s1 + $0x158] sm:$0xff]  ;;  %v489_v3 = vpack.c.bf16 %v459_v0, %v457_v63  ;;  %v461_v5 = vld [vmem:[%s2042_s1 + $0x140] sm:$0xff]  ;;  %v463_v6 = vld [vmem:[%s2042_s1 + $0x150] sm:$0xff] }
  0x16   : > { %626 = vmatpush1.bf16.msra.mxu0 %v477_v25  ;;  %1352 = vmatpush1.bf16.msra.mxu1 %v477_v25  ;;  %v492_v4 = vpack.c.bf16 %v464_v2, %v462_v1  ;;  %v466_v7 = vld [vmem:[%s2042_s1 + $0x168] sm:$0xff]  ;;  %v468_v8 = vld [vmem:[%s2042_s1 + $0x178] sm:$0xff]  ;;  %v491_v9 = vpack.c.bf16 %v463_v6, %v461_v5  ;;  %v465_v11 = vld [vmem:[%s2042_s1 + $0x160] sm:$0xff] }
  0x17   : > { %627 = vmatprep.subr.bf16.mxu0 %v480_v26  ;;  %1340 = vmatprep.subr.bf16.mxu1 %v480_v26  ;;  %v494_v10 = vpack.c.bf16 %v468_v8, %v466_v7  ;;  %v467_v12 = vld [vmem:[%s2042_s1 + $0x170] sm:$0xff]  ;;  %v470_v13 = vld [vmem:[%s2042_s1 + $0x188] sm:$0xff]  ;;  %v469_v14 = vld [vmem:[%s2042_s1 + $0x180] sm:$0xff] }
  0x18   : > { %v493_v15 = vpack.c.bf16 %v467_v12, %v465_v11  ;;  %v496_v16 = vpack.c.bf16 %v470_v13, %v470_v13  ;;  %v495_v17 = vpack.c.bf16 %v469_v14, %v469_v14  ;;  %v195_v18 = vld [vmem:[%s1520_s6] sm:$0xff]  ;;  %v197_v19 = vld [vmem:[%s1520_s6 + $0x10] sm:$0xff]  ;;  %v200_v22 = vld [vmem:[%s1520_s6 + $0x28] sm:$0xff] }
  0x19   : > { %v271_v20 = vld [vmem:[%s1520_s6 + $0x260] sm:$0xff]  ;;  %v273_v21 = vld [vmem:[%s1520_s6 + $0x270] sm:$0xff]  ;;  %v202_v24 = vld [vmem:[%s1520_s6 + $0x38] sm:$0xff]  ;;  %v345_v27 = vpack.c.bf16 %v197_v19, %v195_v18 }
  0x1a   : > { %628 = vmatpush1.bf16.msra.mxu0 %v479_v31  ;;  %1353 = vmatpush1.bf16.msra.mxu1 %v479_v31  ;;  %v614_v23 = vsel %vm612_vm1, %v495_v17, 0  ;;  %v276_v25 = vld [vmem:[%s1520_s6 + $0x288] sm:$0xff]  ;;  %v278_v26 = vld [vmem:[%s1520_s6 + $0x298] sm:$0xff]  ;;  %v383_v28 = vpack.c.bf16 %v273_v21, %v271_v20  ;;  %v348_v29 = vpack.c.bf16 %v202_v24, %v200_v22  ;;  %v199_v31 = vld [vmem:[%s1520_s6 + $0x20] sm:$0xff] }
  0x1b   : > { %629 = vmatprep.subr.bf16.mxu0 %v482_v35  ;;  %1341 = vmatprep.subr.bf16.mxu1 %v482_v35  ;;  %v386_v30 = vpack.c.bf16 %v278_v26, %v276_v25  ;;  %v201_v32 = vld [vmem:[%s1520_s6 + $0x30] sm:$0xff]  ;;  %v275_v33 = vld [vmem:[%s1520_s6 + $0x280] sm:$0xff]  ;;  %v204_v35 = vld [vmem:[%s1520_s6 + $0x48] sm:$0xff] }
  0x1c   : > { %v277_v34 = vld [vmem:[%s1520_s6 + $0x290] sm:$0xff]  ;;  %v206_v36 = vld [vmem:[%s1520_s6 + $0x58] sm:$0xff]  ;;  %v280_v37 = vld [vmem:[%s1520_s6 + $0x2a8] sm:$0xff]  ;;  %v347_v39 = vpack.c.bf16 %v201_v32, %v199_v31 }
  0x1d   : > { %v282_v38 = vld [vmem:[%s1520_s6 + $0x2b8] sm:$0xff]  ;;  %v385_v40 = vpack.c.bf16 %v277_v34, %v275_v33  ;;  %v350_v41 = vpack.c.bf16 %v206_v36, %v204_v35  ;;  %v279_v45 = vld [vmem:[%s1520_s6 + $0x2a0] sm:$0xff]  ;;  %v281_v46 = vld [vmem:[%s1520_s6 + $0x2b0] sm:$0xff] }
  0x1e   : > { %630 = vmatpush1.bf16.msra.mxu0 %v481_v43  ;;  %1354 = vmatpush1.bf16.msra.mxu1 %v481_v43  ;;  %v388_v42 = vpack.c.bf16 %v282_v38, %v280_v37  ;;  %v203_v43 = vld [vmem:[%s1520_s6 + $0x40] sm:$0xff]  ;;  %v208_v47 = vld [vmem:[%s1520_s6 + $0x68] sm:$0xff]  ;;  %v210_v48 = vld [vmem:[%s1520_s6 + $0x78] sm:$0xff]  ;;  %v387_v52 = vpack.c.bf16 %v281_v46, %v279_v45 }
  0x1f   : > { %631 = vmatprep.subr.bf16.mxu0 %v484_v44  ;;  %1342 = vmatprep.subr.bf16.mxu1 %v484_v44  ;;  %v205_v44 = vld [vmem:[%s1520_s6 + $0x50] sm:$0xff]  ;;  %v352_v53 = vpack.c.bf16 %v210_v48, %v208_v47  ;;  %v283_v57 = vld [vmem:[%s1520_s6 + $0x2c0] sm:$0xff]  ;;  %v212_v59 = vld [vmem:[%s1520_s6 + $0x88] sm:$0xff] }
  0x20   : > { %v349_v51 = vpack.c.bf16 %v205_v44, %v203_v43  ;;  %v285_v58 = vld [vmem:[%s1520_s6 + $0x2d0] sm:$0xff]  ;;  %v214_v60 = vld [vmem:[%s1520_s6 + $0x98] sm:$0xff]  ;;  %v287_v5 = vld [vmem:[%s1520_s6 + $0x2e0] sm:$0xff] }
  0x21   : > { %v389_v0 = vpack.c.bf16 %v285_v58, %v283_v57  ;;  %v354_v1 = vpack.c.bf16 %v214_v60, %v212_v59  ;;  %v289_v6 = vld [vmem:[%s1520_s6 + $0x2f0] sm:$0xff]  ;;  %v216_v7 = vld [vmem:[%s1520_s6 + $0xa8] sm:$0xff]  ;;  %v218_v8 = vld [vmem:[%s1520_s6 + $0xb8] sm:$0xff] }
  0x22   : > { %632 = vmatpush1.bf16.msra.mxu0 %v483_v49  ;;  %1355 = vmatpush1.bf16.msra.mxu1 %v483_v49  ;;  %v284_v49 = vld [vmem:[%s1520_s6 + $0x2c8] sm:$0xff]  ;;  %v391_v12 = vpack.c.bf16 %v289_v6, %v287_v5  ;;  %v356_v13 = vpack.c.bf16 %v218_v8, %v216_v7  ;;  %v291_v17 = vld [vmem:[%s1520_s6 + $0x300] sm:$0xff]  ;;  %v293_v18 = vld [vmem:[%s1520_s6 + $0x310] sm:$0xff] }
  0x23   : > { %633 = vmatprep.subr.bf16.mxu0 %v486_v50  ;;  %1343 = vmatprep.subr.bf16.mxu1 %v486_v50  ;;  %v286_v50 = vld [vmem:[%s1520_s6 + $0x2d8] sm:$0xff]  ;;  %v220_v19 = vld [vmem:[%s1520_s6 + $0xc8] sm:$0xff]  ;;  %v393_v24 = vpack.c.bf16 %v293_v18, %v291_v17 }
  0x24   : > { %v390_v54 = vpack.c.bf16 %v286_v50, %v284_v49  ;;  %v222_v20 = vld [vmem:[%s1520_s6 + $0xd8] sm:$0xff]  ;;  %v296_v21 = vld [vmem:[%s1520_s6 + $0x328] sm:$0xff] }
  0x25   : > { %v298_v22 = vld [vmem:[%s1520_s6 + $0x338] sm:$0xff]  ;;  %v358_v25 = vpack.c.bf16 %v222_v20, %v220_v19  ;;  %v224_v31 = vld [vmem:[%s1520_s6 + $0xe8] sm:$0xff] }
  0x26   : > { %634 = vmatpush1.bf16.msra.mxu0 %v485_v55  ;;  %1356 = vmatpush1.bf16.msra.mxu1 %v485_v55  ;;  %v207_v55 = vld [vmem:[%s1520_s6 + $0x60] sm:$0xff]  ;;  %v396_v26 = vpack.c.bf16 %v298_v22, %v296_v21  ;;  %v226_v32 = vld [vmem:[%s1520_s6 + $0xf8] sm:$0xff]  ;;  %v300_v33 = vld [vmem:[%s1520_s6 + $0x348] sm:$0xff] }
  0x27   : > { %635 = vmatprep.subr.bf16.mxu0 %v488_v56  ;;  %1344 = vmatprep.subr.bf16.mxu1 %v488_v56  ;;  %v209_v56 = vld [vmem:[%s1520_s6 + $0x70] sm:$0xff]  ;;  %v302_v34 = vld [vmem:[%s1520_s6 + $0x358] sm:$0xff]  ;;  %v360_v37 = vpack.c.bf16 %v226_v32, %v224_v31  ;;  %v228_v43 = vld [vmem:[%s1520_s6 + $0x108] sm:$0xff] }
  0x28   : > { %v351_v63 = vpack.c.bf16 %v209_v56, %v207_v55  ;;  %v398_v38 = vpack.c.bf16 %v302_v34, %v300_v33  ;;  %v230_v44 = vld [vmem:[%s1520_s6 + $0x118] sm:$0xff]  ;;  %v304_v45 = vld [vmem:[%s1520_s6 + $0x368] sm:$0xff] }
  0x29   : > { %v306_v46 = vld [vmem:[%s1520_s6 + $0x378] sm:$0xff]  ;;  %v362_v49 = vpack.c.bf16 %v230_v44, %v228_v43  ;;  %v232_v55 = vld [vmem:[%s1520_s6 + $0x128] sm:$0xff] }
  0x2a   : > { %636 = vmatpush1.bf16.msra.mxu0 %v487_v61  ;;  %1357 = vmatpush1.bf16.msra.mxu1 %v487_v61  ;;  %v288_v61 = vld [vmem:[%s1520_s6 + $0x2e8] sm:$0xff]  ;;  %v400_v50 = vpack.c.bf16 %v306_v46, %v304_v45  ;;  %v234_v56 = vld [vmem:[%s1520_s6 + $0x138] sm:$0xff] }
  0x2b   : > { %637 = vmatprep.subr.bf16.mxu0 %v490_v62  ;;  %1345 = vmatprep.subr.bf16.mxu1 %v490_v62  ;;  %v290_v62 = vld [vmem:[%s1520_s6 + $0x2f8] sm:$0xff]  ;;  %v308_v57 = vld [vmem:[%s1520_s6 + $0x388] sm:$0xff] }
  0x2c   : > { %v392_v2 = vpack.c.bf16 %v290_v62, %v288_v61  ;;  %v310_v58 = vld [vmem:[%s1520_s6 + $0x398] sm:$0xff]  ;;  %v364_v61 = vpack.c.bf16 %v234_v56, %v232_v55  ;;  %v312_v5 = vld [vmem:[%s1520_s6 + $0x3a8] sm:$0xff] }
  0x2d   : > { %v402_v62 = vpack.c.bf16 %v310_v58, %v308_v57  ;;  %v314_v6 = vld [vmem:[%s1520_s6 + $0x3b8] sm:$0xff]  ;;  %v316_v17 = vld [vmem:[%s1520_s6 + $0x3c8] sm:$0xff] }
  0x2e   : > { %638 = vmatpush1.bf16.msra.mxu0 %v489_v3  ;;  %1358 = vmatpush1.bf16.msra.mxu1 %v489_v3  ;;  %v211_v3 = vld [vmem:[%s1520_s6 + $0x80] sm:$0xff]  ;;  %v318_v18 = vld [vmem:[%s1520_s6 + $0x3d8] sm:$0xff] }
  0x2f   : > { %639 = vmatprep.subr.bf16.mxu0 %v492_v4  ;;  %1346 = vmatprep.subr.bf16.mxu1 %v492_v4  ;;  %v213_v4 = vld [vmem:[%s1520_s6 + $0x90] sm:$0xff]  ;;  %v406_v22 = vpack.c.bf16 %v318_v18, %v316_v17 }
  0x30   : > { %v353_v11 = vpack.c.bf16 %v213_v4, %v211_v3  ;;  %v236_v3 = vld [vmem:[%s1520_s6 + $0x148] sm:$0xff]  ;;  %v238_v4 = vld [vmem:[%s1520_s6 + $0x158] sm:$0xff] }
  0x32   : > { %640 = vmatpush1.bf16.msra.mxu0 %v491_v9  ;;  %1359 = vmatpush1.bf16.msra.mxu1 %v491_v9  ;;  %v292_v9 = vld [vmem:[%s1520_s6 + $0x308] sm:$0xff] }
  0x33   : > { %641 = vmatprep.subr.bf16.mxu0 %v494_v10  ;;  %1347 = vmatprep.subr.bf16.mxu1 %v494_v10  ;;  %v294_v10 = vld [vmem:[%s1520_s6 + $0x318] sm:$0xff] }
  0x34   : > { %v394_v14 = vpack.c.bf16 %v294_v10, %v292_v9  ;;  %v366_v9 = vpack.c.bf16 %v238_v4, %v236_v3  ;;  %v404_v10 = vpack.c.bf16 %v314_v6, %v312_v5 }
  0x36   : > { %642 = vmatpush1.bf16.msra.mxu0 %v493_v15  ;;  %1360 = vmatpush1.bf16.msra.mxu1 %v493_v15  ;;  %v215_v15 = vld [vmem:[%s1520_s6 + $0xa0] sm:$0xff] }
  0x37   : > { %1293 = vmatprep.subr.msk.bf16.mxu0 %vm612_vm1, %v496_v16  ;;  %1348 = vmatprep.subr.msk.bf16.mxu1 %vm612_vm1, %v496_v16  ;;  %v217_v16 = vld [vmem:[%s1520_s6 + $0xb0] sm:$0xff] }
  0x3a   : > { %644 = vmatpush1.bf16.msra.mxu0 %v614_v23  ;;  %1361 = vmatpush1.bf16.msra.mxu1 %v614_v23  ;;  %v355_v23 = vpack.c.bf16 %v217_v16, %v215_v15  ;;  %v240_v15 = vld [vmem:[%s1520_s6 + $0x168] sm:$0xff]  ;;  %v242_v16 = vld [vmem:[%s1520_s6 + $0x178] sm:$0xff] }
  0x3b   : > { %v368_v21 = vpack.c.bf16 %v242_v16, %v240_v15 }
  0x3d   : > { %652 = vmatmul.mubr.bf16.vlgmr.msra.gmra.mrb[0].mxu0 %v345_v27  ;;  %842 = vmatmul.mubr.bf16.vlgmr.msra.gmra.mrb[0].mxu1 %v383_v28  ;;  %v219_v27 = vld [vmem:[%s1520_s6 + $0xc0] sm:$0xff]  ;;  %v221_v28 = vld [vmem:[%s1520_s6 + $0xd0] sm:$0xff] }
  0x3e   : > { %1295 = vmatprep.mubr.msk.bf16.mxu0 %vm497_vm0, %v348_v29  ;;  %1314 = vmatprep.mubr.msk.bf16.mxu1 %vm497_vm0, %v386_v30  ;;  %v295_v29 = vld [vmem:[%s1520_s6 + $0x320] sm:$0xff]  ;;  %v297_v30 = vld [vmem:[%s1520_s6 + $0x330] sm:$0xff]  ;;  %v357_v35 = vpack.c.bf16 %v221_v28, %v219_v27  ;;  %v244_v27 = vld [vmem:[%s1520_s6 + $0x188] sm:$0xff] }
  0x3f   : > { %v395_v36 = vpack.c.bf16 %v297_v30, %v295_v29  ;;  %v246_v28 = vld [vmem:[%s1520_s6 + $0x198] sm:$0xff]  ;;  %v320_v29 = vld [vmem:[%s1520_s6 + $0x3e8] sm:$0xff] }
  0x40   : > { %v322_v30 = vld [vmem:[%s1520_s6 + $0x3f8] sm:$0xff]  ;;  %v370_v33 = vpack.c.bf16 %v246_v28, %v244_v27 }
  0x41   : > { %v408_v34 = vpack.c.bf16 %v322_v30, %v320_v29 }
  0x45   : > { %662 = vmatmul.mubr.bf16.gmra.mrb[4].mxu0 %v347_v39  ;;  %852 = vmatmul.mubr.bf16.gmra.mrb[4].mxu1 %v385_v40  ;;  %v223_v39 = vld [vmem:[%s1520_s6 + $0xe0] sm:$0xff]  ;;  %v225_v40 = vld [vmem:[%s1520_s6 + $0xf0] sm:$0xff] }
  0x46   : > { %1296 = vmatprep.mubr.msk.bf16.mxu0 %vm497_vm0, %v350_v41  ;;  %1315 = vmatprep.mubr.msk.bf16.mxu1 %vm497_vm0, %v388_v42  ;;  %v299_v41 = vld [vmem:[%s1520_s6 + $0x340] sm:$0xff]  ;;  %v301_v42 = vld [vmem:[%s1520_s6 + $0x350] sm:$0xff]  ;;  %v359_v47 = vpack.c.bf16 %v225_v40, %v223_v39  ;;  %v248_v39 = vld [vmem:[%s1520_s6 + $0x1a8] sm:$0xff] }
  0x47   : > { %v397_v48 = vpack.c.bf16 %v301_v42, %v299_v41  ;;  %v250_v40 = vld [vmem:[%s1520_s6 + $0x1b8] sm:$0xff]  ;;  %v324_v41 = vld [vmem:[%s1520_s6 + $0x408] sm:$0xff] }
  0x48   : > { %v326_v42 = vld [vmem:[%s1520_s6 + $0x418] sm:$0xff]  ;;  %v372_v45 = vpack.c.bf16 %v250_v40, %v248_v39 }
  0x49   : > { %v410_v46 = vpack.c.bf16 %v326_v42, %v324_v41  ;;  %v267_v42 = vld [vmem:[%s1520_s6 + $0x240] sm:$0xff] }
  0x4d   : > { %672 = vmatmul.mubr.bf16.gmra.mrb[8].mxu0 %v349_v51  ;;  %862 = vmatmul.mubr.bf16.gmra.mrb[8].mxu1 %v387_v52  ;;  %v227_v51 = vld [vmem:[%s1520_s6 + $0x100] sm:$0xff]  ;;  %v229_v52 = vld [vmem:[%s1520_s6 + $0x110] sm:$0xff] }
  0x4e   : > { %1297 = vmatprep.mubr.msk.bf16.mxu0 %vm497_vm0, %v352_v53  ;;  %1316 = vmatprep.mubr.msk.bf16.mxu1 %vm497_vm0, %v390_v54  ;;  %v303_v53 = vld [vmem:[%s1520_s6 + $0x360] sm:$0xff]  ;;  %v305_v54 = vld [vmem:[%s1520_s6 + $0x370] sm:$0xff]  ;;  %v361_v59 = vpack.c.bf16 %v229_v52, %v227_v51  ;;  %v252_v51 = vld [vmem:[%s1520_s6 + $0x1c8] sm:$0xff] }
  0x4f   : > { %v399_v60 = vpack.c.bf16 %v305_v54, %v303_v53  ;;  %v254_v52 = vld [vmem:[%s1520_s6 + $0x1d8] sm:$0xff]  ;;  %v328_v53 = vld [vmem:[%s1520_s6 + $0x428] sm:$0xff] }
  0x50   : > { %v330_v54 = vld [vmem:[%s1520_s6 + $0x438] sm:$0xff]  ;;  %v374_v57 = vpack.c.bf16 %v254_v52, %v252_v51 }
  0x51   : > { %v412_v58 = vpack.c.bf16 %v330_v54, %v328_v53 }
  0x55   : > { %682 = vmatmul.mubr.bf16.gmra.mrb[12].mxu0 %v351_v63  ;;  %872 = vmatmul.mubr.bf16.gmra.mrb[12].mxu1 %v389_v0  ;;  %v231_v63 = vld [vmem:[%s1520_s6 + $0x120] sm:$0xff]  ;;  %v233_v0 = vld [vmem:[%s1520_s6 + $0x130] sm:$0xff] }
  0x56   : > { %1298 = vmatprep.mubr.msk.bf16.mxu0 %vm497_vm0, %v354_v1  ;;  %1317 = vmatprep.mubr.msk.bf16.mxu1 %vm497_vm0, %v392_v2  ;;  %v307_v1 = vld [vmem:[%s1520_s6 + $0x380] sm:$0xff]  ;;  %v309_v2 = vld [vmem:[%s1520_s6 + $0x390] sm:$0xff]  ;;  %v363_v7 = vpack.c.bf16 %v233_v0, %v231_v63  ;;  %v256_v63 = vld [vmem:[%s1520_s6 + $0x1e8] sm:$0xff] }
  0x57   : > { %v401_v8 = vpack.c.bf16 %v309_v2, %v307_v1  ;;  %v258_v0 = vld [vmem:[%s1520_s6 + $0x1f8] sm:$0xff]  ;;  %v332_v1 = vld [vmem:[%s1520_s6 + $0x448] sm:$0xff] }
  0x58   : > { %v334_v2 = vld [vmem:[%s1520_s6 + $0x458] sm:$0xff]  ;;  %v376_v5 = vpack.c.bf16 %v258_v0, %v256_v63 }
  0x59   : > { %v414_v6 = vpack.c.bf16 %v334_v2, %v332_v1 }
  0x5d   : > { %692 = vmatmul.mubr.bf16.gmra.mrb[16].mxu0 %v353_v11  ;;  %882 = vmatmul.mubr.bf16.gmra.mrb[16].mxu1 %v391_v12  ;;  %v235_v11 = vld [vmem:[%s1520_s6 + $0x140] sm:$0xff]  ;;  %v237_v12 = vld [vmem:[%s1520_s6 + $0x150] sm:$0xff] }
  0x5e   : > { %1299 = vmatprep.mubr.msk.bf16.mxu0 %vm497_vm0, %v356_v13  ;;  %1318 = vmatprep.mubr.msk.bf16.mxu1 %vm497_vm0, %v394_v14  ;;  %v311_v13 = vld [vmem:[%s1520_s6 + $0x3a0] sm:$0xff]  ;;  %v313_v14 = vld [vmem:[%s1520_s6 + $0x3b0] sm:$0xff]  ;;  %v365_v19 = vpack.c.bf16 %v237_v12, %v235_v11  ;;  %v260_v11 = vld [vmem:[%s1520_s6 + $0x208] sm:$0xff] }
  0x5f   : > { %v403_v20 = vpack.c.bf16 %v313_v14, %v311_v13  ;;  %v262_v12 = vld [vmem:[%s1520_s6 + $0x218] sm:$0xff]  ;;  %v336_v13 = vld [vmem:[%s1520_s6 + $0x468] sm:$0xff] }
  0x60   : > { %v338_v14 = vld [vmem:[%s1520_s6 + $0x478] sm:$0xff]  ;;  %v378_v17 = vpack.c.bf16 %v262_v12, %v260_v11 }
  0x61   : > { %v416_v18 = vpack.c.bf16 %v338_v14, %v336_v13 }
  0x65   : > { %702 = vmatmul.mubr.bf16.gmra.mrb[20].mxu0 %v355_v23  ;;  %892 = vmatmul.mubr.bf16.gmra.mrb[20].mxu1 %v393_v24  ;;  %v239_v23 = vld [vmem:[%s1520_s6 + $0x160] sm:$0xff]  ;;  %v241_v24 = vld [vmem:[%s1520_s6 + $0x170] sm:$0xff] }
  0x66   : > { %1300 = vmatprep.mubr.msk.bf16.mxu0 %vm497_vm0, %v358_v25  ;;  %1319 = vmatprep.mubr.msk.bf16.mxu1 %vm497_vm0, %v396_v26  ;;  %v315_v25 = vld [vmem:[%s1520_s6 + $0x3c0] sm:$0xff]  ;;  %v317_v26 = vld [vmem:[%s1520_s6 + $0x3d0] sm:$0xff]  ;;  %v367_v31 = vpack.c.bf16 %v241_v24, %v239_v23  ;;  %v264_v23 = vld [vmem:[%s1520_s6 + $0x228] sm:$0xff] }
  0x67   : > { %v405_v32 = vpack.c.bf16 %v317_v26, %v315_v25  ;;  %v266_v24 = vld [vmem:[%s1520_s6 + $0x238] sm:$0xff]  ;;  %v340_v25 = vld [vmem:[%s1520_s6 + $0x488] sm:$0xff] }
  0x68   : > { %v342_v26 = vld [vmem:[%s1520_s6 + $0x498] sm:$0xff]  ;;  %v380_v29 = vpack.c.bf16 %v266_v24, %v264_v23 }
  0x69   : > { %v418_v30 = vpack.c.bf16 %v342_v26, %v340_v25 }
  0x6d   : > { %712 = vmatmul.mubr.bf16.gmra.mrb[24].mxu0 %v357_v35  ;;  %902 = vmatmul.mubr.bf16.gmra.mrb[24].mxu1 %v395_v36  ;;  %v243_v35 = vld [vmem:[%s1520_s6 + $0x180] sm:$0xff]  ;;  %v245_v36 = vld [vmem:[%s1520_s6 + $0x190] sm:$0xff] }
  0x6e   : > { %1301 = vmatprep.mubr.msk.bf16.mxu0 %vm497_vm0, %v360_v37  ;;  %1320 = vmatprep.mubr.msk.bf16.mxu1 %vm497_vm0, %v398_v38  ;;  %v319_v37 = vld [vmem:[%s1520_s6 + $0x3e0] sm:$0xff]  ;;  %v321_v38 = vld [vmem:[%s1520_s6 + $0x3f0] sm:$0xff]  ;;  %v369_v43 = vpack.c.bf16 %v245_v36, %v243_v35  ;;  %v268_v35 = vld [vmem:[%s1520_s6 + $0x248] sm:$0xff] }
  0x6f   : > { %v407_v44 = vpack.c.bf16 %v321_v38, %v319_v37  ;;  %v270_v36 = vld [vmem:[%s1520_s6 + $0x258] sm:$0xff]  ;;  %v344_v37 = vld [vmem:[%s1520_s6 + $0x4a8] sm:$0xff] }
  0x70   : > { %v382_v40 = vpack.c.bf16 %v270_v36, %v268_v35  ;;  %v420_v41 = vpack.c.bf16 %v344_v37, %v344_v37 }
  0x75   : > { %722 = vmatmul.mubr.bf16.gmra.mrb[28].mxu0 %v359_v47  ;;  %912 = vmatmul.mubr.bf16.gmra.mrb[28].mxu1 %v397_v48  ;;  %v247_v47 = vld [vmem:[%s1520_s6 + $0x1a0] sm:$0xff]  ;;  %v249_v48 = vld [vmem:[%s1520_s6 + $0x1b0] sm:$0xff] }
  0x76   : > { %1302 = vmatprep.mubr.msk.bf16.mxu0 %vm497_vm0, %v362_v49  ;;  %1321 = vmatprep.mubr.msk.bf16.mxu1 %vm497_vm0, %v400_v50  ;;  %v323_v49 = vld [vmem:[%s1520_s6 + $0x400] sm:$0xff]  ;;  %v325_v50 = vld [vmem:[%s1520_s6 + $0x410] sm:$0xff]  ;;  %v371_v55 = vpack.c.bf16 %v249_v48, %v247_v47 }
  0x77   : > { %v409_v56 = vpack.c.bf16 %v325_v50, %v323_v49 }
  0x7d   : > { %732 = vmatmul.mubr.bf16.gmra.mrb[32].mxu0 %v361_v59  ;;  %922 = vmatmul.mubr.bf16.gmra.mrb[32].mxu1 %v399_v60  ;;  %v251_v59 = vld [vmem:[%s1520_s6 + $0x1c0] sm:$0xff]  ;;  %v253_v60 = vld [vmem:[%s1520_s6 + $0x1d0] sm:$0xff] }
  0x7e   : > { %1303 = vmatprep.mubr.msk.bf16.mxu0 %vm497_vm0, %v364_v61  ;;  %1322 = vmatprep.mubr.msk.bf16.mxu1 %vm497_vm0, %v402_v62  ;;  %v327_v61 = vld [vmem:[%s1520_s6 + $0x420] sm:$0xff]  ;;  %v329_v62 = vld [vmem:[%s1520_s6 + $0x430] sm:$0xff]  ;;  %v373_v3 = vpack.c.bf16 %v253_v60, %v251_v59 }
  0x7f   : > { %v411_v4 = vpack.c.bf16 %v329_v62, %v327_v61 }
  0x85   : > { %742 = vmatmul.mubr.bf16.gmra.mrb[36].mxu0 %v363_v7  ;;  %932 = vmatmul.mubr.bf16.gmra.mrb[36].mxu1 %v401_v8  ;;  %v255_v7 = vld [vmem:[%s1520_s6 + $0x1e0] sm:$0xff]  ;;  %v257_v8 = vld [vmem:[%s1520_s6 + $0x1f0] sm:$0xff] }
  0x86   : > { %1304 = vmatprep.mubr.msk.bf16.mxu0 %vm497_vm0, %v366_v9  ;;  %1323 = vmatprep.mubr.msk.bf16.mxu1 %vm497_vm0, %v404_v10  ;;  %v331_v9 = vld [vmem:[%s1520_s6 + $0x440] sm:$0xff]  ;;  %v333_v10 = vld [vmem:[%s1520_s6 + $0x450] sm:$0xff]  ;;  %v375_v15 = vpack.c.bf16 %v257_v8, %v255_v7 }
  0x87   : > { %v413_v16 = vpack.c.bf16 %v333_v10, %v331_v9 }
  0x8d   : > { %752 = vmatmul.mubr.bf16.gmra.mrb[40].mxu0 %v365_v19  ;;  %942 = vmatmul.mubr.bf16.gmra.mrb[40].mxu1 %v403_v20  ;;  %v259_v19 = vld [vmem:[%s1520_s6 + $0x200] sm:$0xff]  ;;  %v261_v20 = vld [vmem:[%s1520_s6 + $0x210] sm:$0xff] }
  0x8e   : > { %1305 = vmatprep.mubr.msk.bf16.mxu0 %vm497_vm0, %v368_v21  ;;  %1324 = vmatprep.mubr.msk.bf16.mxu1 %vm497_vm0, %v406_v22  ;;  %v335_v21 = vld [vmem:[%s1520_s6 + $0x460] sm:$0xff]  ;;  %v337_v22 = vld [vmem:[%s1520_s6 + $0x470] sm:$0xff]  ;;  %v377_v27 = vpack.c.bf16 %v261_v20, %v259_v19 }
  0x8f   : > { %v415_v28 = vpack.c.bf16 %v337_v22, %v335_v21 }
  0x95   : > { %762 = vmatmul.mubr.bf16.gmra.mrb[44].mxu0 %v367_v31  ;;  %952 = vmatmul.mubr.bf16.gmra.mrb[44].mxu1 %v405_v32  ;;  %v263_v31 = vld [vmem:[%s1520_s6 + $0x220] sm:$0xff]  ;;  %v265_v32 = vld [vmem:[%s1520_s6 + $0x230] sm:$0xff] }
  0x96   : > { %1306 = vmatprep.mubr.msk.bf16.mxu0 %vm497_vm0, %v370_v33  ;;  %1325 = vmatprep.mubr.msk.bf16.mxu1 %vm497_vm0, %v408_v34  ;;  %v339_v33 = vld [vmem:[%s1520_s6 + $0x480] sm:$0xff]  ;;  %v341_v34 = vld [vmem:[%s1520_s6 + $0x490] sm:$0xff]  ;;  %v379_v38 = vpack.c.bf16 %v265_v32, %v263_v31 }
  0x97   : > { %v417_v39 = vpack.c.bf16 %v341_v34, %v339_v33 }
  0x9d   : > { %772 = vmatmul.mubr.bf16.gmra.mrb[48].mxu0 %v369_v43  ;;  %962 = vmatmul.mubr.bf16.gmra.mrb[48].mxu1 %v407_v44  ;;  %v269_v43 = vld [vmem:[%s1520_s6 + $0x250] sm:$0xff]  ;;  %v343_v44 = vld [vmem:[%s1520_s6 + $0x4a0] sm:$0xff] }
  0x9e   : > { %1307 = vmatprep.mubr.msk.bf16.mxu0 %vm497_vm0, %v372_v45  ;;  %1326 = vmatprep.mubr.msk.bf16.mxu1 %vm497_vm0, %v410_v46  ;;  %v381_v45 = vpack.c.bf16 %v269_v43, %v267_v42  ;;  %v419_v46 = vpack.c.bf16 %v343_v44, %v343_v44 }
  0xa5   : > { %782 = vmatmul.mubr.bf16.gmra.mrb[52].mxu0 %v371_v55  ;;  %972 = vmatmul.mubr.bf16.gmra.mrb[52].mxu1 %v409_v56 }
  0xa6   : > { %1308 = vmatprep.mubr.msk.bf16.mxu0 %vm497_vm0, %v374_v57  ;;  %1327 = vmatprep.mubr.msk.bf16.mxu1 %vm497_vm0, %v412_v58 }
  0xad   : > { %792 = vmatmul.mubr.bf16.gmra.mrb[56].mxu0 %v373_v3  ;;  %982 = vmatmul.mubr.bf16.gmra.mrb[56].mxu1 %v411_v4 }
  0xae   : > { %1309 = vmatprep.mubr.msk.bf16.mxu0 %vm497_vm0, %v376_v5  ;;  %1328 = vmatprep.mubr.msk.bf16.mxu1 %vm497_vm0, %v414_v6 }
  0xb5   : > { %802 = vmatmul.mubr.bf16.gmra.mrb[60].mxu0 %v375_v15  ;;  %992 = vmatmul.mubr.bf16.gmra.mrb[60].mxu1 %v413_v16 }
  0xb6   : > { %1310 = vmatprep.mubr.msk.bf16.mxu0 %vm497_vm0, %v378_v17  ;;  %1329 = vmatprep.mubr.msk.bf16.mxu1 %vm497_vm0, %v416_v18 }
  0xbd   : > { %812 = vmatmul.mubr.bf16.gmra.mrb[64].mxu0 %v377_v27  ;;  %1002 = vmatmul.mubr.bf16.gmra.mrb[64].mxu1 %v415_v28 }
  0xbe   : > { %1311 = vmatprep.mubr.msk.bf16.mxu0 %vm497_vm0, %v380_v29  ;;  %1330 = vmatprep.mubr.msk.bf16.mxu1 %vm497_vm0, %v418_v30 }
  0xc5   : > { %822 = vmatmul.mubr.bf16.gmra.mrb[68].mxu0 %v379_v38  ;;  %1012 = vmatmul.mubr.bf16.gmra.mrb[68].mxu1 %v417_v39 }
  0xc6   : > { %1312 = vmatprep.mubr.msk.bf16.mxu0 %vm497_vm0, %v382_v40  ;;  %1331 = vmatprep.mubr.msk.bf16.mxu1 %vm497_vm0, %v420_v41 }
  0xcd   : > { %832 = vmatmul.mubr.bf16.gmra.mrb[72].mxu0 %v381_v45  ;;  %1022 = vmatmul.mubr.bf16.gmra.mrb[72].mxu1 %v419_v46 }
 0x110   : > { %v653_v47 = vpop.f32.mrb[0].mxu0  ;;  %v843_v48 = vpop.f32.mrb[0].mxu1 }
 0x111   : > { %1030 = vst [vmem:[%s1805_s30] sm:$0xff] %v653_v47  ;;  %1107 = vst [vmem:[%s1805_s30 + $0x260] sm:$0xff] %v843_v48  ;;  %v655_v49 = vpop.f32.mrb[1].mxu0  ;;  %v845_v50 = vpop.f32.mrb[1].mxu1 }
 0x112   : > { %1032 = vst.msk [vmem:[%s1805_s30 + $0x8] sm:$0xff] %vm1031_vm2, %v655_v49  ;;  %1108 = vst.msk [vmem:[%s1805_s30 + $0x268] sm:$0xff] %vm1031_vm2, %v845_v50  ;;  %v657_v51 = vpop.f32.mrb[2].mxu0  ;;  %v847_v52 = vpop.f32.mrb[2].mxu1 }
 0x113   : > { %1033 = vst [vmem:[%s1805_s30 + $0x10] sm:$0xff] %v657_v51  ;;  %1109 = vst [vmem:[%s1805_s30 + $0x270] sm:$0xff] %v847_v52  ;;  %v659_v53 = vpop.f32.mrb[3].mxu0  ;;  %v849_v54 = vpop.f32.mrb[3].mxu1 }
 0x114   : > { %1034 = vst.msk [vmem:[%s1805_s30 + $0x18] sm:$0xff] %vm1031_vm2, %v659_v53  ;;  %1110 = vst.msk [vmem:[%s1805_s30 + $0x278] sm:$0xff] %vm1031_vm2, %v849_v54 }
 0x118   : > { %v663_v55 = vpop.f32.mrb[4].mxu0  ;;  %v853_v56 = vpop.f32.mrb[4].mxu1 }
 0x119   : > { %1035 = vst [vmem:[%s1805_s30 + $0x20] sm:$0xff] %v663_v55  ;;  %1111 = vst [vmem:[%s1805_s30 + $0x280] sm:$0xff] %v853_v56  ;;  %v665_v57 = vpop.f32.mrb[5].mxu0  ;;  %v855_v58 = vpop.f32.mrb[5].mxu1 }
 0x11a   : > { %1036 = vst.msk [vmem:[%s1805_s30 + $0x28] sm:$0xff] %vm1031_vm2, %v665_v57  ;;  %1112 = vst.msk [vmem:[%s1805_s30 + $0x288] sm:$0xff] %vm1031_vm2, %v855_v58  ;;  %v667_v59 = vpop.f32.mrb[6].mxu0  ;;  %v857_v60 = vpop.f32.mrb[6].mxu1 }
 0x11b   : > { %1037 = vst [vmem:[%s1805_s30 + $0x30] sm:$0xff] %v667_v59  ;;  %1113 = vst [vmem:[%s1805_s30 + $0x290] sm:$0xff] %v857_v60  ;;  %v669_v61 = vpop.f32.mrb[7].mxu0  ;;  %v859_v62 = vpop.f32.mrb[7].mxu1 }
 0x11c   : > { %1038 = vst.msk [vmem:[%s1805_s30 + $0x38] sm:$0xff] %vm1031_vm2, %v669_v61  ;;  %1114 = vst.msk [vmem:[%s1805_s30 + $0x298] sm:$0xff] %vm1031_vm2, %v859_v62 }
 0x120   : > { %v673_v63 = vpop.f32.mrb[8].mxu0  ;;  %v863_v0 = vpop.f32.mrb[8].mxu1 }
 0x121   : > { %1039 = vst [vmem:[%s1805_s30 + $0x40] sm:$0xff] %v673_v63  ;;  %1115 = vst [vmem:[%s1805_s30 + $0x2a0] sm:$0xff] %v863_v0  ;;  %v675_v1 = vpop.f32.mrb[9].mxu0  ;;  %v865_v2 = vpop.f32.mrb[9].mxu1 }
 0x122   : > { %1040 = vst.msk [vmem:[%s1805_s30 + $0x48] sm:$0xff] %vm1031_vm2, %v675_v1  ;;  %1116 = vst.msk [vmem:[%s1805_s30 + $0x2a8] sm:$0xff] %vm1031_vm2, %v865_v2  ;;  %v677_v3 = vpop.f32.mrb[10].mxu0  ;;  %v867_v4 = vpop.f32.mrb[10].mxu1 }
 0x123   : > { %1041 = vst [vmem:[%s1805_s30 + $0x50] sm:$0xff] %v677_v3  ;;  %1117 = vst [vmem:[%s1805_s30 + $0x2b0] sm:$0xff] %v867_v4  ;;  %v679_v5 = vpop.f32.mrb[11].mxu0  ;;  %v869_v6 = vpop.f32.mrb[11].mxu1 }
 0x124   : > { %1042 = vst.msk [vmem:[%s1805_s30 + $0x58] sm:$0xff] %vm1031_vm2, %v679_v5  ;;  %1118 = vst.msk [vmem:[%s1805_s30 + $0x2b8] sm:$0xff] %vm1031_vm2, %v869_v6 }
 0x128   : > { %v683_v7 = vpop.f32.mrb[12].mxu0  ;;  %v873_v8 = vpop.f32.mrb[12].mxu1 }
 0x129   : > { %1043 = vst [vmem:[%s1805_s30 + $0x60] sm:$0xff] %v683_v7  ;;  %1119 = vst [vmem:[%s1805_s30 + $0x2c0] sm:$0xff] %v873_v8  ;;  %v685_v9 = vpop.f32.mrb[13].mxu0  ;;  %v875_v10 = vpop.f32.mrb[13].mxu1 }
 0x12a   : > { %1044 = vst.msk [vmem:[%s1805_s30 + $0x68] sm:$0xff] %vm1031_vm2, %v685_v9  ;;  %1120 = vst.msk [vmem:[%s1805_s30 + $0x2c8] sm:$0xff] %vm1031_vm2, %v875_v10  ;;  %v687_v11 = vpop.f32.mrb[14].mxu0  ;;  %v877_v12 = vpop.f32.mrb[14].mxu1 }
 0x12b   : > { %1045 = vst [vmem:[%s1805_s30 + $0x70] sm:$0xff] %v687_v11  ;;  %1121 = vst [vmem:[%s1805_s30 + $0x2d0] sm:$0xff] %v877_v12  ;;  %v689_v13 = vpop.f32.mrb[15].mxu0  ;;  %v879_v14 = vpop.f32.mrb[15].mxu1 }
 0x12c   : > { %1046 = vst.msk [vmem:[%s1805_s30 + $0x78] sm:$0xff] %vm1031_vm2, %v689_v13  ;;  %1122 = vst.msk [vmem:[%s1805_s30 + $0x2d8] sm:$0xff] %vm1031_vm2, %v879_v14 }
 0x130   : > { %v693_v15 = vpop.f32.mrb[16].mxu0  ;;  %v883_v16 = vpop.f32.mrb[16].mxu1 }
 0x131   : > { %1047 = vst [vmem:[%s1805_s30 + $0x80] sm:$0xff] %v693_v15  ;;  %1123 = vst [vmem:[%s1805_s30 + $0x2e0] sm:$0xff] %v883_v16  ;;  %v695_v17 = vpop.f32.mrb[17].mxu0  ;;  %v885_v18 = vpop.f32.mrb[17].mxu1 }
 0x132   : > { %1048 = vst.msk [vmem:[%s1805_s30 + $0x88] sm:$0xff] %vm1031_vm2, %v695_v17  ;;  %1124 = vst.msk [vmem:[%s1805_s30 + $0x2e8] sm:$0xff] %vm1031_vm2, %v885_v18  ;;  %v697_v19 = vpop.f32.mrb[18].mxu0  ;;  %v887_v20 = vpop.f32.mrb[18].mxu1 }
 0x133   : > { %1049 = vst [vmem:[%s1805_s30 + $0x90] sm:$0xff] %v697_v19  ;;  %1125 = vst [vmem:[%s1805_s30 + $0x2f0] sm:$0xff] %v887_v20  ;;  %v699_v21 = vpop.f32.mrb[19].mxu0  ;;  %v889_v22 = vpop.f32.mrb[19].mxu1 }
 0x134   : > { %1050 = vst.msk [vmem:[%s1805_s30 + $0x98] sm:$0xff] %vm1031_vm2, %v699_v21  ;;  %1126 = vst.msk [vmem:[%s1805_s30 + $0x2f8] sm:$0xff] %vm1031_vm2, %v889_v22 }
 0x138   : > { %v703_v23 = vpop.f32.mrb[20].mxu0  ;;  %v893_v24 = vpop.f32.mrb[20].mxu1 }
 0x139   : > { %1051 = vst [vmem:[%s1805_s30 + $0xa0] sm:$0xff] %v703_v23  ;;  %1127 = vst [vmem:[%s1805_s30 + $0x300] sm:$0xff] %v893_v24  ;;  %v705_v25 = vpop.f32.mrb[21].mxu0  ;;  %v895_v26 = vpop.f32.mrb[21].mxu1 }
 0x13a   : > { %1052 = vst.msk [vmem:[%s1805_s30 + $0xa8] sm:$0xff] %vm1031_vm2, %v705_v25  ;;  %1128 = vst.msk [vmem:[%s1805_s30 + $0x308] sm:$0xff] %vm1031_vm2, %v895_v26  ;;  %v707_v27 = vpop.f32.mrb[22].mxu0  ;;  %v897_v28 = vpop.f32.mrb[22].mxu1 }
 0x13b   : > { %1053 = vst [vmem:[%s1805_s30 + $0xb0] sm:$0xff] %v707_v27  ;;  %1129 = vst [vmem:[%s1805_s30 + $0x310] sm:$0xff] %v897_v28  ;;  %v709_v29 = vpop.f32.mrb[23].mxu0  ;;  %v899_v30 = vpop.f32.mrb[23].mxu1 }
 0x13c   : > { %1054 = vst.msk [vmem:[%s1805_s30 + $0xb8] sm:$0xff] %vm1031_vm2, %v709_v29  ;;  %1130 = vst.msk [vmem:[%s1805_s30 + $0x318] sm:$0xff] %vm1031_vm2, %v899_v30 }
 0x140   : > { %v713_v31 = vpop.f32.mrb[24].mxu0  ;;  %v903_v32 = vpop.f32.mrb[24].mxu1 }
 0x141   : > { %1055 = vst [vmem:[%s1805_s30 + $0xc0] sm:$0xff] %v713_v31  ;;  %1131 = vst [vmem:[%s1805_s30 + $0x320] sm:$0xff] %v903_v32  ;;  %v715_v33 = vpop.f32.mrb[25].mxu0  ;;  %v905_v34 = vpop.f32.mrb[25].mxu1 }
 0x142   : > { %1056 = vst.msk [vmem:[%s1805_s30 + $0xc8] sm:$0xff] %vm1031_vm2, %v715_v33  ;;  %1132 = vst.msk [vmem:[%s1805_s30 + $0x328] sm:$0xff] %vm1031_vm2, %v905_v34  ;;  %v717_v35 = vpop.f32.mrb[26].mxu0  ;;  %v907_v36 = vpop.f32.mrb[26].mxu1 }
 0x143   : > { %1057 = vst [vmem:[%s1805_s30 + $0xd0] sm:$0xff] %v717_v35  ;;  %1133 = vst [vmem:[%s1805_s30 + $0x330] sm:$0xff] %v907_v36  ;;  %v719_v37 = vpop.f32.mrb[27].mxu0  ;;  %v909_v38 = vpop.f32.mrb[27].mxu1 }
 0x144   : > { %1058 = vst.msk [vmem:[%s1805_s30 + $0xd8] sm:$0xff] %vm1031_vm2, %v719_v37  ;;  %1134 = vst.msk [vmem:[%s1805_s30 + $0x338] sm:$0xff] %vm1031_vm2, %v909_v38 }
 0x148   : > { %v723_v39 = vpop.f32.mrb[28].mxu0  ;;  %v913_v40 = vpop.f32.mrb[28].mxu1 }
 0x149   : > { %1059 = vst [vmem:[%s1805_s30 + $0xe0] sm:$0xff] %v723_v39  ;;  %1135 = vst [vmem:[%s1805_s30 + $0x340] sm:$0xff] %v913_v40  ;;  %v725_v41 = vpop.f32.mrb[29].mxu0  ;;  %v915_v42 = vpop.f32.mrb[29].mxu1 }
 0x14a   : > { %1060 = vst.msk [vmem:[%s1805_s30 + $0xe8] sm:$0xff] %vm1031_vm2, %v725_v41  ;;  %1136 = vst.msk [vmem:[%s1805_s30 + $0x348] sm:$0xff] %vm1031_vm2, %v915_v42  ;;  %v727_v43 = vpop.f32.mrb[30].mxu0  ;;  %v917_v44 = vpop.f32.mrb[30].mxu1 }
 0x14b   : > { %1061 = vst [vmem:[%s1805_s30 + $0xf0] sm:$0xff] %v727_v43  ;;  %1137 = vst [vmem:[%s1805_s30 + $0x350] sm:$0xff] %v917_v44  ;;  %v729_v45 = vpop.f32.mrb[31].mxu0  ;;  %v919_v46 = vpop.f32.mrb[31].mxu1 }
 0x14c   : > { %1062 = vst.msk [vmem:[%s1805_s30 + $0xf8] sm:$0xff] %vm1031_vm2, %v729_v45  ;;  %1138 = vst.msk [vmem:[%s1805_s30 + $0x358] sm:$0xff] %vm1031_vm2, %v919_v46 }
 0x150   : > { %v733_v47 = vpop.f32.mrb[32].mxu0  ;;  %v923_v48 = vpop.f32.mrb[32].mxu1 }
 0x151   : > { %1063 = vst [vmem:[%s1805_s30 + $0x100] sm:$0xff] %v733_v47  ;;  %1139 = vst [vmem:[%s1805_s30 + $0x360] sm:$0xff] %v923_v48  ;;  %v735_v49 = vpop.f32.mrb[33].mxu0  ;;  %v925_v50 = vpop.f32.mrb[33].mxu1 }
 0x152   : > { %1064 = vst.msk [vmem:[%s1805_s30 + $0x108] sm:$0xff] %vm1031_vm2, %v735_v49  ;;  %1140 = vst.msk [vmem:[%s1805_s30 + $0x368] sm:$0xff] %vm1031_vm2, %v925_v50  ;;  %v737_v51 = vpop.f32.mrb[34].mxu0  ;;  %v927_v52 = vpop.f32.mrb[34].mxu1 }
 0x153   : > { %1065 = vst [vmem:[%s1805_s30 + $0x110] sm:$0xff] %v737_v51  ;;  %1141 = vst [vmem:[%s1805_s30 + $0x370] sm:$0xff] %v927_v52  ;;  %v739_v53 = vpop.f32.mrb[35].mxu0  ;;  %v929_v54 = vpop.f32.mrb[35].mxu1 }
 0x154   : > { %1066 = vst.msk [vmem:[%s1805_s30 + $0x118] sm:$0xff] %vm1031_vm2, %v739_v53  ;;  %1142 = vst.msk [vmem:[%s1805_s30 + $0x378] sm:$0xff] %vm1031_vm2, %v929_v54 }
 0x158   : > { %v743_v55 = vpop.f32.mrb[36].mxu0  ;;  %v933_v56 = vpop.f32.mrb[36].mxu1 }
 0x159   : > { %1067 = vst [vmem:[%s1805_s30 + $0x120] sm:$0xff] %v743_v55  ;;  %1143 = vst [vmem:[%s1805_s30 + $0x380] sm:$0xff] %v933_v56  ;;  %v745_v57 = vpop.f32.mrb[37].mxu0  ;;  %v935_v58 = vpop.f32.mrb[37].mxu1 }
 0x15a   : > { %1068 = vst.msk [vmem:[%s1805_s30 + $0x128] sm:$0xff] %vm1031_vm2, %v745_v57  ;;  %1144 = vst.msk [vmem:[%s1805_s30 + $0x388] sm:$0xff] %vm1031_vm2, %v935_v58  ;;  %v747_v59 = vpop.f32.mrb[38].mxu0  ;;  %v937_v60 = vpop.f32.mrb[38].mxu1 }
 0x15b   : > { %1069 = vst [vmem:[%s1805_s30 + $0x130] sm:$0xff] %v747_v59  ;;  %1145 = vst [vmem:[%s1805_s30 + $0x390] sm:$0xff] %v937_v60  ;;  %v749_v61 = vpop.f32.mrb[39].mxu0  ;;  %v939_v62 = vpop.f32.mrb[39].mxu1 }
 0x15c   : > { %1070 = vst.msk [vmem:[%s1805_s30 + $0x138] sm:$0xff] %vm1031_vm2, %v749_v61  ;;  %1146 = vst.msk [vmem:[%s1805_s30 + $0x398] sm:$0xff] %vm1031_vm2, %v939_v62 }
 0x160   : > { %v753_v63 = vpop.f32.mrb[40].mxu0  ;;  %v943_v0 = vpop.f32.mrb[40].mxu1 }
 0x161   : > { %1071 = vst [vmem:[%s1805_s30 + $0x140] sm:$0xff] %v753_v63  ;;  %1147 = vst [vmem:[%s1805_s30 + $0x3a0] sm:$0xff] %v943_v0  ;;  %v755_v1 = vpop.f32.mrb[41].mxu0  ;;  %v945_v2 = vpop.f32.mrb[41].mxu1 }
 0x162   : > { %1072 = vst.msk [vmem:[%s1805_s30 + $0x148] sm:$0xff] %vm1031_vm2, %v755_v1  ;;  %1148 = vst.msk [vmem:[%s1805_s30 + $0x3a8] sm:$0xff] %vm1031_vm2, %v945_v2  ;;  %v757_v3 = vpop.f32.mrb[42].mxu0  ;;  %v947_v4 = vpop.f32.mrb[42].mxu1 }
 0x163   : > { %1073 = vst [vmem:[%s1805_s30 + $0x150] sm:$0xff] %v757_v3  ;;  %1149 = vst [vmem:[%s1805_s30 + $0x3b0] sm:$0xff] %v947_v4  ;;  %v759_v5 = vpop.f32.mrb[43].mxu0  ;;  %v949_v6 = vpop.f32.mrb[43].mxu1 }
 0x164   : > { %1074 = vst.msk [vmem:[%s1805_s30 + $0x158] sm:$0xff] %vm1031_vm2, %v759_v5  ;;  %1150 = vst.msk [vmem:[%s1805_s30 + $0x3b8] sm:$0xff] %vm1031_vm2, %v949_v6 }
 0x168   : > { %v763_v7 = vpop.f32.mrb[44].mxu0  ;;  %v953_v8 = vpop.f32.mrb[44].mxu1 }
 0x169   : > { %1075 = vst [vmem:[%s1805_s30 + $0x160] sm:$0xff] %v763_v7  ;;  %1151 = vst [vmem:[%s1805_s30 + $0x3c0] sm:$0xff] %v953_v8  ;;  %v765_v9 = vpop.f32.mrb[45].mxu0  ;;  %v955_v10 = vpop.f32.mrb[45].mxu1 }
 0x16a   : > { %1076 = vst.msk [vmem:[%s1805_s30 + $0x168] sm:$0xff] %vm1031_vm2, %v765_v9  ;;  %1152 = vst.msk [vmem:[%s1805_s30 + $0x3c8] sm:$0xff] %vm1031_vm2, %v955_v10  ;;  %v767_v11 = vpop.f32.mrb[46].mxu0  ;;  %v957_v12 = vpop.f32.mrb[46].mxu1 }
 0x16b   : > { %1077 = vst [vmem:[%s1805_s30 + $0x170] sm:$0xff] %v767_v11  ;;  %1153 = vst [vmem:[%s1805_s30 + $0x3d0] sm:$0xff] %v957_v12  ;;  %v769_v13 = vpop.f32.mrb[47].mxu0  ;;  %v959_v14 = vpop.f32.mrb[47].mxu1 }
 0x16c   : > { %1078 = vst.msk [vmem:[%s1805_s30 + $0x178] sm:$0xff] %vm1031_vm2, %v769_v13  ;;  %1154 = vst.msk [vmem:[%s1805_s30 + $0x3d8] sm:$0xff] %vm1031_vm2, %v959_v14 }
 0x170   : > { %v773_v15 = vpop.f32.mrb[48].mxu0  ;;  %v963_v16 = vpop.f32.mrb[48].mxu1 }
 0x171   : > { %1079 = vst [vmem:[%s1805_s30 + $0x180] sm:$0xff] %v773_v15  ;;  %1155 = vst [vmem:[%s1805_s30 + $0x3e0] sm:$0xff] %v963_v16  ;;  %v775_v17 = vpop.f32.mrb[49].mxu0  ;;  %v965_v18 = vpop.f32.mrb[49].mxu1 }
 0x172   : > { %1080 = vst.msk [vmem:[%s1805_s30 + $0x188] sm:$0xff] %vm1031_vm2, %v775_v17  ;;  %1156 = vst.msk [vmem:[%s1805_s30 + $0x3e8] sm:$0xff] %vm1031_vm2, %v965_v18  ;;  %v777_v19 = vpop.f32.mrb[50].mxu0  ;;  %v967_v20 = vpop.f32.mrb[50].mxu1 }
 0x173   : > { %1081 = vst [vmem:[%s1805_s30 + $0x190] sm:$0xff] %v777_v19  ;;  %1157 = vst [vmem:[%s1805_s30 + $0x3f0] sm:$0xff] %v967_v20  ;;  %v779_v21 = vpop.f32.mrb[51].mxu0  ;;  %v969_v22 = vpop.f32.mrb[51].mxu1 }
 0x174   : > { %1082 = vst.msk [vmem:[%s1805_s30 + $0x198] sm:$0xff] %vm1031_vm2, %v779_v21  ;;  %1158 = vst.msk [vmem:[%s1805_s30 + $0x3f8] sm:$0xff] %vm1031_vm2, %v969_v22 }
 0x178   : > { %v783_v23 = vpop.f32.mrb[52].mxu0  ;;  %v973_v24 = vpop.f32.mrb[52].mxu1 }
 0x179   : > { %1083 = vst [vmem:[%s1805_s30 + $0x1a0] sm:$0xff] %v783_v23  ;;  %1159 = vst [vmem:[%s1805_s30 + $0x400] sm:$0xff] %v973_v24  ;;  %v785_v25 = vpop.f32.mrb[53].mxu0  ;;  %v975_v26 = vpop.f32.mrb[53].mxu1 }
 0x17a   : > { %1084 = vst.msk [vmem:[%s1805_s30 + $0x1a8] sm:$0xff] %vm1031_vm2, %v785_v25  ;;  %1160 = vst.msk [vmem:[%s1805_s30 + $0x408] sm:$0xff] %vm1031_vm2, %v975_v26  ;;  %v787_v27 = vpop.f32.mrb[54].mxu0  ;;  %v977_v28 = vpop.f32.mrb[54].mxu1 }
 0x17b   : > { %1085 = vst [vmem:[%s1805_s30 + $0x1b0] sm:$0xff] %v787_v27  ;;  %1161 = vst [vmem:[%s1805_s30 + $0x410] sm:$0xff] %v977_v28  ;;  %v789_v29 = vpop.f32.mrb[55].mxu0  ;;  %v979_v30 = vpop.f32.mrb[55].mxu1 }
 0x17c   : > { %1086 = vst.msk [vmem:[%s1805_s30 + $0x1b8] sm:$0xff] %vm1031_vm2, %v789_v29  ;;  %1162 = vst.msk [vmem:[%s1805_s30 + $0x418] sm:$0xff] %vm1031_vm2, %v979_v30 }
 0x180   : > { %v793_v31 = vpop.f32.mrb[56].mxu0  ;;  %v983_v32 = vpop.f32.mrb[56].mxu1 }
 0x181   : > { %1087 = vst [vmem:[%s1805_s30 + $0x1c0] sm:$0xff] %v793_v31  ;;  %1163 = vst [vmem:[%s1805_s30 + $0x420] sm:$0xff] %v983_v32  ;;  %v795_v33 = vpop.f32.mrb[57].mxu0  ;;  %v985_v34 = vpop.f32.mrb[57].mxu1 }
 0x182   : > { %1088 = vst.msk [vmem:[%s1805_s30 + $0x1c8] sm:$0xff] %vm1031_vm2, %v795_v33  ;;  %1164 = vst.msk [vmem:[%s1805_s30 + $0x428] sm:$0xff] %vm1031_vm2, %v985_v34  ;;  %v797_v35 = vpop.f32.mrb[58].mxu0  ;;  %v987_v36 = vpop.f32.mrb[58].mxu1 }
 0x183   : > { %1089 = vst [vmem:[%s1805_s30 + $0x1d0] sm:$0xff] %v797_v35  ;;  %1165 = vst [vmem:[%s1805_s30 + $0x430] sm:$0xff] %v987_v36  ;;  %v799_v37 = vpop.f32.mrb[59].mxu0  ;;  %v989_v38 = vpop.f32.mrb[59].mxu1 }
 0x184   : > { %1090 = vst.msk [vmem:[%s1805_s30 + $0x1d8] sm:$0xff] %vm1031_vm2, %v799_v37  ;;  %1166 = vst.msk [vmem:[%s1805_s30 + $0x438] sm:$0xff] %vm1031_vm2, %v989_v38 }
 0x188   : > { %v803_v39 = vpop.f32.mrb[60].mxu0  ;;  %v993_v40 = vpop.f32.mrb[60].mxu1 }
 0x189   : > { %1091 = vst [vmem:[%s1805_s30 + $0x1e0] sm:$0xff] %v803_v39  ;;  %1167 = vst [vmem:[%s1805_s30 + $0x440] sm:$0xff] %v993_v40  ;;  %v805_v41 = vpop.f32.mrb[61].mxu0  ;;  %v995_v42 = vpop.f32.mrb[61].mxu1 }
 0x18a   : > { %1092 = vst.msk [vmem:[%s1805_s30 + $0x1e8] sm:$0xff] %vm1031_vm2, %v805_v41  ;;  %1168 = vst.msk [vmem:[%s1805_s30 + $0x448] sm:$0xff] %vm1031_vm2, %v995_v42  ;;  %v807_v43 = vpop.f32.mrb[62].mxu0  ;;  %v997_v44 = vpop.f32.mrb[62].mxu1 }
 0x18b   : > { %1093 = vst [vmem:[%s1805_s30 + $0x1f0] sm:$0xff] %v807_v43  ;;  %1169 = vst [vmem:[%s1805_s30 + $0x450] sm:$0xff] %v997_v44  ;;  %v809_v45 = vpop.f32.mrb[63].mxu0  ;;  %v999_v46 = vpop.f32.mrb[63].mxu1 }
 0x18c   : > { %1094 = vst.msk [vmem:[%s1805_s30 + $0x1f8] sm:$0xff] %vm1031_vm2, %v809_v45  ;;  %1170 = vst.msk [vmem:[%s1805_s30 + $0x458] sm:$0xff] %vm1031_vm2, %v999_v46 }
 0x190   : > { %v813_v47 = vpop.f32.mrb[64].mxu0  ;;  %v1003_v48 = vpop.f32.mrb[64].mxu1 }
 0x191   : > { %1095 = vst [vmem:[%s1805_s30 + $0x200] sm:$0xff] %v813_v47  ;;  %1171 = vst [vmem:[%s1805_s30 + $0x460] sm:$0xff] %v1003_v48  ;;  %v815_v49 = vpop.f32.mrb[65].mxu0  ;;  %v1005_v50 = vpop.f32.mrb[65].mxu1 }
 0x192   : > { %1096 = vst.msk [vmem:[%s1805_s30 + $0x208] sm:$0xff] %vm1031_vm2, %v815_v49  ;;  %1172 = vst.msk [vmem:[%s1805_s30 + $0x468] sm:$0xff] %vm1031_vm2, %v1005_v50  ;;  %v817_v51 = vpop.f32.mrb[66].mxu0  ;;  %v1007_v52 = vpop.f32.mrb[66].mxu1 }
 0x193   : > { %1097 = vst [vmem:[%s1805_s30 + $0x210] sm:$0xff] %v817_v51  ;;  %1173 = vst [vmem:[%s1805_s30 + $0x470] sm:$0xff] %v1007_v52  ;;  %v819_v53 = vpop.f32.mrb[67].mxu0  ;;  %v1009_v54 = vpop.f32.mrb[67].mxu1 }
 0x194   : > { %1098 = vst.msk [vmem:[%s1805_s30 + $0x218] sm:$0xff] %vm1031_vm2, %v819_v53  ;;  %1174 = vst.msk [vmem:[%s1805_s30 + $0x478] sm:$0xff] %vm1031_vm2, %v1009_v54 }
 0x198   : > { %v823_v55 = vpop.f32.mrb[68].mxu0  ;;  %v1013_v56 = vpop.f32.mrb[68].mxu1 }
 0x199   : > { %1099 = vst [vmem:[%s1805_s30 + $0x220] sm:$0xff] %v823_v55  ;;  %1175 = vst [vmem:[%s1805_s30 + $0x480] sm:$0xff] %v1013_v56  ;;  %v825_v57 = vpop.f32.mrb[69].mxu0  ;;  %v1015_v58 = vpop.f32.mrb[69].mxu1 }
 0x19a   : > { %1100 = vst.msk [vmem:[%s1805_s30 + $0x228] sm:$0xff] %vm1031_vm2, %v825_v57  ;;  %1176 = vst.msk [vmem:[%s1805_s30 + $0x488] sm:$0xff] %vm1031_vm2, %v1015_v58  ;;  %v827_v59 = vpop.f32.mrb[70].mxu0  ;;  %v1017_v60 = vpop.f32.mrb[70].mxu1 }
 0x19b   : > { %1101 = vst [vmem:[%s1805_s30 + $0x230] sm:$0xff] %v827_v59  ;;  %1177 = vst [vmem:[%s1805_s30 + $0x490] sm:$0xff] %v1017_v60  ;;  %v829_v61 = vpop.f32.mrb[71].mxu0  ;;  %v1019_v62 = vpop.f32.mrb[71].mxu1 }
 0x19c   : > { %1102 = vst.msk [vmem:[%s1805_s30 + $0x238] sm:$0xff] %vm1031_vm2, %v829_v61  ;;  %1178 = vst.msk [vmem:[%s1805_s30 + $0x498] sm:$0xff] %vm1031_vm2, %v1019_v62 }
 0x1a0   : > { %v833_v63 = vpop.f32.mrb[72].mxu0  ;;  %v1023_v0 = vpop.f32.mrb[72].mxu1 }
 0x1a1   : > { %1103 = vst [vmem:[%s1805_s30 + $0x240] sm:$0xff] %v833_v63  ;;  %1179 = vst [vmem:[%s1805_s30 + $0x4a0] sm:$0xff] %v1023_v0  ;;  %v835_v1 = vpop.f32.mrb[73].mxu0  ;;  %v1025_v2 = vpop.f32.mrb[73].mxu1 }
 0x1a2   : > { %1104 = vst.msk [vmem:[%s1805_s30 + $0x248] sm:$0xff] %vm1031_vm2, %v835_v1  ;;  %1180 = vst.msk [vmem:[%s1805_s30 + $0x4a8] sm:$0xff] %vm1031_vm2, %v1025_v2  ;;  %v837_v3 = vpop.f32.mrb[74].mxu0  ;;  %v1027_v4 = vpop.f32.mrb[74].mxu1 }
 0x1a3   : > { %1105 = vst [vmem:[%s1805_s30 + $0x250] sm:$0xff] %v837_v3  ;;  %v839_v5 = vpop.f32.mrb[75].mxu0  ;;  %v1028_v6 = vpop.f32.mrb[75].mxu1 }
 0x1a4   : > { %1106 = vst.msk [vmem:[%s1805_s30 + $0x258] sm:$0xff] %vm1031_vm2, %v839_v5 }
 0x1a5 PF: > { %s12_s11 = sadd.s32 1, %s1408_s11   ;;  %s2045_s9 = smov %s1404_s10 }
 0x1a6   : > { %p9_p5 = scmp.ge.s32.totalorder %s12_s11, 4   ;;  %s2046_s10 = smov %s2048_s12 }
 0x1a8   :  { %11 = sbr.rel (!%p9_p5) target bundleno = 2 (0x2), region = 61 }

</bundles_post_ra>
